<compile_context>
chip_gen: v5e
topology: v5e:2x2
jax: 0.10.0
libtpu: 0.0.40
codegen_flags: <defaults>
</compile_context>

<pallas_src>
import jax
import jax.numpy as jnp
from jax.experimental import pallas as pl
from jax.experimental.pallas import tpu as pltpu


def _round_up(x, m):
    return (x + m - 1) // m * m


def _linear_kernel(x_ref, w_ref, b_ref, o_ref):
    # x_ref: (TM, D) input dtype   w_ref: (D, N_PAD) bf16
    # b_ref: (1, N_PAD) f32        o_ref: (TM, N_PAD) out dtype (bf16)
    x_bf16 = x_ref[...].astype(jnp.bfloat16)
    acc = jnp.dot(x_bf16, w_ref[...], preferred_element_type=jnp.float32)
    o_ref[...] = (acc + b_ref[...]).astype(o_ref.dtype)


def prepare_params(weight, bias, num_classes):
    """One-time param prep: transpose + pad to a lane-dense (D, 128k) slab.

    weight: (NUM_CLASSES, DATA_SIZE) -- PyTorch nn.Linear convention.
    bias:   (NUM_CLASSES,)
    Done once (outside the per-step forward path) so the transpose/cast/pad
    is not recurring per-call HBM traffic.
    """
    data_size = weight.shape[1]
    n_pad = _round_up(max(num_classes, 128), 128)
    w_p = jnp.zeros((data_size, n_pad), jnp.bfloat16).at[:, :num_classes].set(
        weight.T.astype(jnp.bfloat16))
    b_p = jnp.zeros((1, n_pad), jnp.float32).at[:, :num_classes].set(
        bias.reshape(1, -1).astype(jnp.float32))
    return w_p, b_p


def _choose_tile(batch, data_size, n_pad, x_bytes, out_bytes):
    """Pick the batch tile from a VMEM budget (works for v5e/v6e/v7x)."""
    if batch <= 256:
        # Single tile covering the whole (unpadded) batch: block shape equals
        # the full array dims, so the (8,128) divisibility rule is satisfied.
        return batch
    # VMEM per batch row: double-buffered x stream + double-buffered output.
    per_row = 2 * data_size * x_bytes + 2 * n_pad * out_bytes
    # Resident: bf16 weight slab + f32 bias.
    resident = data_size * n_pad * 2 + n_pad * 4
    budget = 24 * 1024 * 1024          # leaves headroom under the 32 MiB limit
    tm = max(8, (budget - resident) // per_row)
    tm = min(tm, 2048)                 # diminishing returns past ~1-2k rows
    # v7x megacore: keep at least 2 batch tiles so both TCs get work.
    tm = min(tm, _round_up((batch + 1) // 2, 8))
    return max(8, (tm // 8) * 8)


def reg_soft_net_forward(x, w_p, b_p, data_size, num_classes,
                         out_dtype=jnp.bfloat16):
    """Forward pass of RegSoftNet.

    x:   any shape whose trailing elements flatten to DATA_SIZE per row
         (e.g. NCHW (B, C, H, W) with C*H*W == DATA_SIZE).  Streamed as-is
         (no dtype-cast / padding copy in the wrapper).
    w_p, b_p: outputs of prepare_params().
    returns (B, NUM_CLASSES) logits in `out_dtype`.
    """
    # Glue: flatten like torch's x.view(-1, DATA_SIZE).  Pure reshape, no copy.
    x2d = x.reshape(-1, data_size)
    batch = x2d.shape[0]
    n_pad = w_p.shape[1]

    x_bytes = jnp.dtype(x2d.dtype).itemsize
    out_bytes = jnp.dtype(out_dtype).itemsize
    tm = _choose_tile(batch, data_size, n_pad, x_bytes, out_bytes)
    grid_m = -(-batch // tm)           # cdiv: partial last tile is masked

    cost = pl.CostEstimate(
        flops=2 * batch * data_size * n_pad,
        bytes_accessed=(x2d.size * x_bytes + w_p.size * 2 + b_p.size * 4
                        + batch * n_pad * out_bytes),
        transcendentals=0,
    )

    out = pl.pallas_call(
        _linear_kernel,
        out_shape=jax.ShapeDtypeStruct((batch, n_pad), out_dtype),
        grid_spec=pltpu.PrefetchScalarGridSpec(
            num_scalar_prefetch=0,
            grid=(grid_m,),
            in_specs=[
                # x: streamed per batch tile (double-buffered by Pallas).
                pl.BlockSpec((tm, data_size), lambda i: (i, 0)),
                # W, b: constant index_map -> fetched once, VMEM-resident.
                pl.BlockSpec((data_size, n_pad), lambda i: (0, 0)),
                pl.BlockSpec((1, n_pad), lambda i: (0, 0)),
            ],
            out_specs=pl.BlockSpec((tm, n_pad), lambda i: (i, 0)),
        ),
        compiler_params=pltpu.CompilerParams(
            dimension_semantics=("parallel",),   # shard over 2 TCs on v7x
            vmem_limit_bytes=32 * 1024 * 1024,   # safe on v5e/v6e/v7x
        ),
        cost_estimate=cost,
    )(x2d, w_p, b_p)

    # Drop only the class padding (no batch padding was added).
    return out[:, :num_classes]


if __name__ == "__main__":
    # Small, MNIST-flavored shapes: batch=2, single channel 16x16 images.
    B, C, H, W = 2, 1, 16, 16
    DATA_SIZE = C * H * W        # 256
    NUM_CLASSES = 10

    key = jax.random.PRNGKey(0)
    kx, kw, kb = jax.random.split(key, 3)

    # Deterministic parameter init mimicking nn.Linear default:
    # U(-1/sqrt(fan_in), 1/sqrt(fan_in)).
    bound = 1.0 / jnp.sqrt(jnp.float32(DATA_SIZE))
    weight = jax.random.uniform(
        kw, (NUM_CLASSES, DATA_SIZE), jnp.float32, -bound, bound
    )
    bias = jax.random.uniform(
        kb, (NUM_CLASSES,), jnp.float32, -bound, bound
    )

    x = jax.random.normal(kx, (B, C, H, W), jnp.float32)

    # One-time parameter prep (outside the forward path).
    w_p, b_p = prepare_params(weight, bias, NUM_CLASSES)

    out = reg_soft_net_forward(x, w_p, b_p, DATA_SIZE, NUM_CLASSES)
    out = jax.block_until_ready(out)

    # Correctness check against plain-JAX f32 reference of the same math.
    # Inputs are cast to bf16 inside the kernel (f32 accumulation) and the
    # logits are emitted as bf16, so use a bf16-consistent tolerance.
    ref = x.reshape(-1, DATA_SIZE) @ weight.T + bias
    assert out.shape == (B, NUM_CLASSES)
    assert jnp.allclose(out.astype(jnp.float32), ref, atol=3e-2, rtol=3e-2), (
        jnp.max(jnp.abs(out.astype(jnp.float32) - ref)))

    print("KERNEL_OK")
</pallas_src>

<mosaic_0001>
module attributes {stable_mosaic.version = 11 : i64} {
  func.func @_linear_kernel(%arg0: i32, %arg1: memref<2x256xf32, #tpu.memory_space<vmem>>, %arg2: memref<256x128xbf16, #tpu.memory_space<vmem>>, %arg3: memref<1x128xf32, #tpu.memory_space<vmem>>, %arg4: memref<2x128xbf16, #tpu.memory_space<vmem>>) attributes {dimension_semantics = [#tpu.dimension_semantics<parallel>], iteration_bounds = array<i64: 1>, scalar_prefetch = 0 : i64, scratch_operands = 0 : i64, tpu.core_type = #tpu.core_type<tc>, window_params = [{transform_indices = @transform_0, window_bounds = array<i64: 2, 256>}, {pipeline_mode = #tpu.pipeline_mode<synchronous>, transform_indices = @transform_1, window_bounds = array<i64: 256, 128>}, {pipeline_mode = #tpu.pipeline_mode<synchronous>, transform_indices = @transform_2, window_bounds = array<i64: 1, 128>}, {transform_indices = @transform_3, window_bounds = array<i64: 2, 128>}]} {
    %c0 = arith.constant 0 : index
    %c0_0 = arith.constant 0 : index
    %0 = vector.load %arg1[%c0, %c0_0] : memref<2x256xf32, #tpu.memory_space<vmem>>, vector<2x256xf32>
    %1 = arith.truncf %0 : vector<2x256xf32> to vector<2x256xbf16>
    %c0_1 = arith.constant 0 : index
    %c0_2 = arith.constant 0 : index
    %2 = vector.load %arg2[%c0_1, %c0_2] : memref<256x128xbf16, #tpu.memory_space<vmem>>, vector<256x128xbf16>
    %cst = arith.constant dense<0.000000e+00> : vector<2x128xf32>
    %3 = tpu.matmul %1, %2, %cst {dimension_numbers = #tpu.dot_dimension_numbers<[1], [0], [0], [1], [0, 0, 1, 1], [], []>} : vector<2x256xbf16>, vector<256x128xbf16>, vector<2x128xf32> -> vector<2x128xf32>
    %c0_3 = arith.constant 0 : index
    %c0_4 = arith.constant 0 : index
    %4 = vector.load %arg3[%c0_3, %c0_4] : memref<1x128xf32, #tpu.memory_space<vmem>>, vector<1x128xf32>
    %5 = vector.broadcast %4 : vector<1x128xf32> to vector<2x128xf32>
    %6 = arith.addf %3, %5 : vector<2x128xf32>
    %7 = arith.truncf %6 : vector<2x128xf32> to vector<2x128xbf16>
    %c0_5 = arith.constant 0 : index
    %c0_6 = arith.constant 0 : index
    %8 = vector.load %arg4[%c0_5, %c0_6] : memref<2x128xbf16, #tpu.memory_space<vmem>>, vector<2x128xbf16>
    tpu.vector_store %arg4[%c0_5, %c0_6], %7 {strides = array<i32>} : memref<2x128xbf16, #tpu.memory_space<vmem>>, vector<2x128xbf16>,
    return
  }
  func.func @transform_0(%arg0: i32) -> (i32, i32) {
    %c0_i32 = arith.constant 0 : i32
    %c0_i32_0 = arith.constant 0 : i32
    return %arg0, %c0_i32 : i32, i32
  }
  func.func @transform_1(%arg0: i32) -> (i32, i32) {
    %c0_i32 = arith.constant 0 : i32
    %c0_i32_0 = arith.constant 0 : i32
    %c0_i32_1 = arith.constant 0 : i32
    return %c0_i32, %c0_i32_0 : i32, i32
  }
  func.func @transform_2(%arg0: i32) -> (i32, i32) {
    %c0_i32 = arith.constant 0 : i32
    %c0_i32_0 = arith.constant 0 : i32
    %c0_i32_1 = arith.constant 0 : i32
    return %c0_i32, %c0_i32_0 : i32, i32
  }
  func.func @transform_3(%arg0: i32) -> (i32, i32) {
    %c0_i32 = arith.constant 0 : i32
    %c0_i32_0 = arith.constant 0 : i32
    return %arg0, %c0_i32 : i32, i32
  }
}

</mosaic_0001>

<bundles_post_ra>
// kernel: tpu_custom_call.1
= control target key start
LH: loop header
LB: loop body
LE: loop exit
PB: predicated region body
PF: predicated region fallthrough
CT: control target
= control target key end

     0   :  { %8 = vsyncpa [#allocation3], 0  ;;  %s433_s0 = inlined_call_operand.hbm [shape: f32[2,256], index: 0, kind: input, shape index: {}]   ;;  %s434_s1 = inlined_call_operand.hbm [shape: bf16[256,128], index: 1, kind: input, shape index: {}]   ;;  %s435_s2 = inlined_call_operand.vmem [shape: f32[1,128], index: 2, kind: input, shape index: {}]   ;;  %s436_s3 = inlined_call_operand.hbm [shape: bf16[2,128], index: 3, kind: output, shape index: {}]  }
   0x1   :  { %9 = vsyncpa [#allocation6], 0 }
   0x2   :  { %10 = vsyncpa [#allocation4], 0  ;;  %s16_s14 = sshll.u32 %s433_s0, 4  ;;  %s396_s15 = smov [#allocation2]   ;;  %s17_s14 = int_to_ptr.hbm [resolvable:$true] %s16_s14 }
   0x3   :  { %s18_s16 = sshll.u32 %s396_s15, 4  ;;  %s26_s19 = sshll.u32 %s434_s1, 4  ;;  %s19_s16 = int_to_ptr.vmem [resolvable:$true] %s18_s16  ;;  %s27_s19 = int_to_ptr.hbm [resolvable:$true] %s26_s19 }
   0x4   :  { %21 = dma.hbm_to_vmem [thread:$0]  %s17_s14, 64, %s19_s16, [#allocation3]  }
   0x5   :  { %s397_s20 = smov [#allocation5]   ;;  %s398_s22 = smov 64  }
   0x6   :  { %s28_s21 = sshll.u32 %s397_s20, 4  ;;  %s399_s23 = smov 4   ;;  %s29_s21 = int_to_ptr.vmem [resolvable:$true] %s28_s21 }
   0x7   :  { %34 = dma.hbm_to_vmem [thread:$0]  %s27_s19, 2048, %s29_s21, [#allocation6], %s398_s22, %s398_s22, %s399_s23  }
   0x8   :  { %390 = dma.done.wait [#allocation3], 64  }
   0x9   :  { %391 = vsyncadd [#allocation3], 4294967232 }
   0xa   :  { %392 = dma.done.wait [#allocation6], 2048  }
   0xb   :  { %393 = vsyncadd [#allocation6], 4294965248  ;;  %v303_v0 = vld [vmem:[#allocation5 + $0x38] sm:$0xff]  ;;  %v302_v2 = vld [vmem:[#allocation5 + $0x30] sm:$0xff]  ;;  %s400_s24 = smov [#allocation7]   ;;  %s221_s28 = sshll.u32 %s436_s3, 4  ;;  %s222_s28 = int_to_ptr.hbm [resolvable:$true] %s221_s28 }
   0xc   :  { %v311_v1 = vld [vmem:[#allocation5 + $0x78] sm:$0xff]  ;;  %186 = vmatpush.bf16.msra.mxu0 %v303_v0  ;;  %v310_v3 = vld [vmem:[#allocation5 + $0x70] sm:$0xff]  ;;  %v301_v5 = vld [vmem:[#allocation5 + $0x28] sm:$0xff]  ;;  %s219_s25 = sshll.u32 %s400_s24, 4  ;;  %s220_s25 = int_to_ptr.vmem [resolvable:$true] %s219_s25 }
   0xd   :  { %199 = vmatpush.bf16.msra.mxu1 %v311_v1  ;;  %v45_v4 = vld [vmem:[#allocation2] sm:$0xf]  ;;  %v309_v6 = vld [vmem:[#allocation5 + $0x68] sm:$0xff]  ;;  %v300_v7 = vld [vmem:[#allocation5 + $0x20] sm:$0xff] }
   0xe   :  { %47 = vst [vmem:[#allocation1] ss:$4 sm:$0xff] %v45_v4  ;;  %v308_v8 = vld [vmem:[#allocation5 + $0x60] sm:$0xff]  ;;  %v299_v9 = vld [vmem:[#allocation5 + $0x18] sm:$0xff]  ;;  %v298_v11 = vld [vmem:[#allocation5 + $0x10] sm:$0xff] }
   0xf   :  { %v307_v10 = vld [vmem:[#allocation5 + $0x58] sm:$0xff]  ;;  %v306_v12 = vld [vmem:[#allocation5 + $0x50] sm:$0xff]  ;;  %v297_v13 = vld [vmem:[#allocation5 + $0x8] sm:$0xff] }
  0x10   :  { %187 = vmatpush.bf16.msra.mxu0 %v302_v2  ;;  %v305_v14 = vld [vmem:[#allocation5 + $0x48] sm:$0xff]  ;;  %v296_v15 = vld [vmem:[#allocation5] sm:$0xff]  ;;  %v317_v21 = vld [vmem:[%s435_s2] ss:$0 sm:$0xff] }
  0x11   :  { %200 = vmatpush.bf16.msra.mxu1 %v310_v3  ;;  %v304_v16 = vld [vmem:[#allocation5 + $0x40] sm:$0xff] }
  0x14   :  { %188 = vmatpush.bf16.msra.mxu0 %v301_v5 }
  0x15   :  { %201 = vmatpush.bf16.msra.mxu1 %v309_v6  ;;  %v48_v17 = vld.sshfl [vmem:[#allocation1] sm:$0xff pattern:$0x73625140]  ;;  %v49_v18 = vld.sshfl [vmem:[#allocation1 + $0x8] sm:$0xff pattern:$0x73625140] }
  0x16   :  { %v52_v19 = vpack.c.bf16 %v48_v17, %v48_v17  ;;  %v53_v20 = vpack.c.bf16 %v49_v18, %v49_v18 }
  0x18   :  { %189 = vmatpush.bf16.msra.mxu0 %v300_v7 }
  0x19   :  { %202 = vmatpush.bf16.msra.mxu1 %v308_v8 }
  0x1c   :  { %190 = vmatpush.bf16.msra.mxu0 %v299_v9 }
  0x1d   :  { %203 = vmatpush.bf16.msra.mxu1 %v307_v10 }
  0x20   :  { %191 = vmatpush.bf16.msra.mxu0 %v298_v11 }
  0x21   :  { %204 = vmatpush.bf16.msra.mxu1 %v306_v12 }
  0x24   :  { %192 = vmatpush.bf16.msra.mxu0 %v297_v13 }
  0x25   :  { %205 = vmatpush.bf16.msra.mxu1 %v305_v14 }
  0x28   :  { %193 = vmatpush.bf16.msra.mxu0 %v296_v15 }
  0x29   :  { %206 = vmatpush.bf16.msra.mxu1 %v304_v16 }
  0x2b   :  { %194 = vmatmul.bf16.vlgmr.msra.gmra.mxu0 %v52_v19 }
  0x2c   :  { %207 = vmatmul.bf16.vlgmr.msra.gmra.mxu1 %v53_v20 }
  0xa8   :  { %v195_v22 = vpop.f32.mrf.mxu0 }
  0xa9   :  { %v208_v23 = vpop.f32.mrf.mxu1  ;;  %v196_v24 = vadd.f32 %v317_v21, %v195_v22 }
  0xab   :  { %v209_v25 = vadd.f32 %v208_v23, %v196_v24 }
  0xad   :  { %v212_v26 = vpack.c.bf16 %v209_v25, %v209_v25 }
  0xaf   :  { %213 = vst [vmem:[#allocation7] sm:$0x1] %v212_v26 }
  0xb0   :  { %v197_v27 = vpop.f32.mrf.mxu0  ;;  %224 = dma.vmem_to_hbm [thread:$0]  %s220_s25, 16, %s222_s28, [#allocation4]  }
  0xb1   :  { %v210_v28 = vpop.f32.mrf.mxu1 }
  0xb2   :  { %394 = dma.done.wait [#allocation4], 16  }
  0xb3   :  { %395 = vsyncadd [#allocation4], 4294967280 }
  0xb4   :  { %229 = vsyncpa [#allocation3], 1 }
  0xb5   :  { %230 = vsyncpa [#allocation6], 1 }
  0xb6   :  { %231 = vsyncpa [#allocation4], 1 }

</bundles_post_ra>
